<compile_context>
chip_gen: v7x
topology: tpu7x:2x2x1
jax: 0.10.0
libtpu: 0.0.40
codegen_flags: <defaults>
</compile_context>

<pallas_src>
import functools

import jax
import jax.numpy as jnp
from jax import lax
from jax.experimental import pallas as pl
from jax.experimental.pallas import tpu as pltpu

BN_EPS = 1e-5
CDT = jnp.bfloat16          # compute dtype for activations (f32 accumulation on MXU)


def _round_up(x, m):
    return (x + m - 1) // m * m


# ----------------------------------------------------------------------------
# Pallas kernel: fused 1x1 conv (matmul) + folded bias/BN + ReLU
#                [+ optional max-pool over `group` consecutive rows]
# ----------------------------------------------------------------------------
def _conv_affine_kernel(x_ref, w_ref, b_ref, o_ref, *, relu, group):
    y = jnp.dot(x_ref[...], w_ref[...], preferred_element_type=jnp.float32)
    y = y + b_ref[...]
    if relu:
        y = jnp.maximum(y, 0.0)
    if group is not None:
        tm, tn = y.shape
        y = jnp.max(y.reshape(tm // group, group, tn), axis=1)
    o_ref[...] = y.astype(o_ref.dtype)


def _choose_tm(M, group, tm_max):
    """Largest multiple of the sublane/pool unit that divides M and fits tm_max."""
    unit = (group or 1) * 16            # 16-row bf16 sublane tile per pooled group
    best = unit
    t = unit
    while t <= tm_max:
        if M % t == 0:
            best = t
        t += unit
    return best


def conv1x1_affine(x, w, shift, *, relu=True, group=None,
                   out_dtype=CDT, tm_max=2048, tn_max=512, trim=True):
    """y = maybe_groupmax(maybe_relu(x @ w + shift)).

    x: [M, Cin]  (cast to bf16; callers keep Cin 128-aligned via their concats)
    w: [Kw, Cout], Kw <= Cin (zero-padded rows up to Cin; BN scale pre-folded)
    shift: [Cout]  folded conv-bias + BN shift (added in f32)
    group: if set, max-reduce every `group` consecutive rows (SA neighbourhood pool).
    """
    M, Cin = x.shape
    Kw, Cout = w.shape
    assert Kw <= Cin
    if group is not None:
        assert M % group == 0

    if Kw < Cin:                                   # zero rows -> no contribution
        w = jnp.pad(w, ((0, Cin - Kw), (0, 0)))

    tn = min(tn_max, _round_up(Cout, 128))
    Np = _round_up(Cout, tn)
    if Np > Cout:                                  # padded cols produce exact zeros
        w = jnp.pad(w, ((0, 0), (0, Np - Cout)))
        shift = jnp.pad(shift, (0, Np - Cout))

    tm = _choose_tm(M, group, tm_max)
    Mp = _round_up(M, tm)
    xp = x.astype(jnp.bfloat16)
    if Mp > M:                                     # never triggers on the real shapes here
        xp = jnp.pad(xp, ((0, Mp - M), (0, 0)))
    wp = w.astype(jnp.bfloat16)
    sh = shift.astype(jnp.float32).reshape(1, Np)

    g = group or 1
    rows_blk = tm // g
    Mout = Mp // g
    out_isz = jnp.dtype(out_dtype).itemsize

    # VMEM budget: double-buffered ins/outs + f32 dot result; capped for v7x (64 MiB phys.)
    vmem_need = 2 * (tm * Cin * 2 + Cin * tn * 2 + rows_blk * tn * out_isz) + tm * tn * 4
    vmem_limit = int(min(48 << 20, max(32 << 20, int(1.5 * vmem_need))))

    out = pl.pallas_call(
        functools.partial(_conv_affine_kernel, relu=relu, group=group),
        out_shape=jax.ShapeDtypeStruct((Mout, Np), out_dtype),
        grid=(Mp // tm, Np // tn),
        in_specs=[
            pl.BlockSpec((tm, Cin), lambda i, j: (i, 0)),
            pl.BlockSpec((Cin, tn), lambda i, j: (0, j)),
            pl.BlockSpec((1, tn), lambda i, j: (0, j)),
        ],
        out_specs=pl.BlockSpec((rows_blk, tn), lambda i, j: (i, j)),
        compiler_params=pltpu.CompilerParams(
            dimension_semantics=("parallel", "parallel"),
            vmem_limit_bytes=vmem_limit),
        cost_estimate=pl.CostEstimate(
            flops=2 * Mp * Cin * Np, transcendentals=0,
            bytes_accessed=Mp * Cin * 2 + Cin * Np * 2 + Mout * Np * out_isz),
    )(xp, wp, sh)

    out = out[:M // g]
    if trim and Np > Cout:
        out = out[:, :Cout]
    return out


def _fold_bn(p):
    scale = p["gamma"] * lax.rsqrt(p["var"] + BN_EPS)
    w = p["w"] * scale[None, :]
    shift = p["beta"] + (p["b"] - p["mean"]) * scale
    return w, shift


def apply_conv_bn_relu(feat, p, *, group=None, trim=True, out_dtype=CDT):
    w, shift = _fold_bn(p)
    return conv1x1_affine(feat, w, shift, relu=True, group=group,
                          trim=trim, out_dtype=out_dtype)


def _pad_channels_concat(parts, multiple=128):
    """Concat along last axis, appending zero channels so Cin is 128-aligned.

    Padding is folded into the concat that must materialize anyway (no extra
    HBM copy of a big activation).  The matching weight rows are zero-padded
    inside conv1x1_affine, so the math is unchanged.
    """
    total = sum(p.shape[-1] for p in parts)
    pad = _round_up(total, multiple) - total
    if pad:
        shp = parts[0].shape[:-1] + (pad,)
        parts = list(parts) + [jnp.zeros(shp, parts[0].dtype)]
    return jnp.concatenate(parts, axis=-1)


# ----------------------------------------------------------------------------
# Plain-JAX glue: PointNet++ sampling / grouping / interpolation
# (data-dependent gathers & sorts — kept in XLA)
# ----------------------------------------------------------------------------
def square_distance(src, dst):
    d = -2.0 * jnp.einsum("bnc,bmc->bnm", src, dst)
    d += jnp.sum(src ** 2, axis=-1)[:, :, None]
    d += jnp.sum(dst ** 2, axis=-1)[:, None, :]
    return d


def index_points(points, idx):
    return jax.vmap(lambda p, i: p[i])(points, idx)


def farthest_point_sample(xyz, npoint):
    # TODO(synk): PyTorch seeds FPS with torch.randint; here we deterministically start at index 0.
    B, N, _ = xyz.shape

    def body(i, carry):
        centroids, distance, farthest = carry
        centroids = centroids.at[:, i].set(farthest)
        centroid = jnp.take_along_axis(xyz, farthest[:, None, None], axis=1)
        dist = jnp.sum((xyz - centroid) ** 2, axis=-1)
        distance = jnp.minimum(distance, dist)
        farthest = jnp.argmax(distance, axis=-1).astype(jnp.int32)
        return centroids, distance, farthest

    init = (jnp.zeros((B, npoint), jnp.int32),
            jnp.full((B, N), 1e10, jnp.float32),
            jnp.zeros((B,), jnp.int32))
    centroids, _, _ = lax.fori_loop(0, npoint, body, init)
    return centroids


def query_ball_point(radius, nsample, xyz, new_xyz):
    B, N, _ = xyz.shape
    S = new_xyz.shape[1]
    sqrdists = square_distance(new_xyz, xyz)
    group_idx = jnp.broadcast_to(jnp.arange(N, dtype=jnp.int32), (B, S, N))
    group_idx = jnp.where(sqrdists > radius ** 2, N, group_idx)
    group_idx = jnp.sort(group_idx, axis=-1)[:, :, :nsample]
    group_first = jnp.broadcast_to(group_idx[:, :, :1], group_idx.shape)
    group_idx = jnp.where(group_idx == N, group_first, group_idx)
    return group_idx


def set_abstraction_msg(xyz, points, npoint, radius_list, nsample_list, branches):
    # xyz: [B, N, 3] f32, points: [B, N, D]  (channel-last)
    B, N, _ = xyz.shape
    fps_idx = farthest_point_sample(xyz, npoint)
    new_xyz = index_points(xyz, fps_idx)                          # [B, S, 3]
    S = npoint
    outs = []
    for i, radius in enumerate(radius_list):
        K = nsample_list[i]
        group_idx = query_ball_point(radius, K, xyz, new_xyz)     # [B, S, K]
        grouped_xyz = (index_points(xyz, group_idx)
                       - new_xyz[:, :, None, :]).astype(CDT)      # [B, S, K, 3]
        grouped_points = index_points(points, group_idx).astype(CDT)
        grouped = _pad_channels_concat([grouped_points, grouped_xyz])
        feat = grouped.reshape(B * S * K, grouped.shape[-1])
        layers = branches[i]
        for li, layer in enumerate(layers):
            last = (li == len(layers) - 1)
            # last layer: neighbourhood max-pool fused into the conv epilogue
            feat = apply_conv_bn_relu(feat, layer,
                                      group=(K if last else None),
                                      trim=last)
        outs.append(feat.reshape(B, S, -1))                       # pooled: [B, S, C]
    return new_xyz, jnp.concatenate(outs, axis=-1)


def feature_propagation(xyz1, xyz2, points1, points2, mlp_layers):
    B, N, _ = xyz1.shape
    dists = square_distance(xyz1, xyz2)                           # [B, N, S]
    neg_d, idx = lax.top_k(-dists, 3)                             # 3 nearest
    d3 = -neg_d
    dist_recip = 1.0 / (d3 + 1e-8)
    weight = dist_recip / jnp.sum(dist_recip, axis=2, keepdims=True)
    gathered = index_points(points2, idx).astype(jnp.float32)     # [B, N, 3, D2]
    interpolated = jnp.sum(gathered * weight[..., None], axis=2).astype(CDT)
    if points1 is not None:
        new_points = _pad_channels_concat([points1.astype(CDT), interpolated])
    else:
        new_points = _pad_channels_concat([interpolated])
    feat = new_points.reshape(B * N, new_points.shape[-1])
    for layer in mlp_layers:
        feat = apply_conv_bn_relu(feat, layer)
    return feat.reshape(B, N, -1)


# ----------------------------------------------------------------------------
# Deterministic parameter construction (inference-mode BatchNorm running stats)
# ----------------------------------------------------------------------------
def build_params(key):
    keys = iter(jax.random.split(key, 128))

    def conv(cin, cout, zero_weight=False):
        kw, kb = jax.random.split(next(keys))
        w = (jnp.zeros((cin, cout), jnp.float32) if zero_weight
             else jax.random.normal(kw, (cin, cout), jnp.float32) / jnp.sqrt(float(cin)))
        b = 0.01 * jax.random.normal(kb, (cout,), jnp.float32)
        return dict(w=w, b=b)

    def conv_bn(cin, cout):
        p = conv(cin, cout)
        p.update(gamma=jnp.ones((cout,), jnp.float32),
                 beta=jnp.zeros((cout,), jnp.float32),
                 mean=jnp.zeros((cout,), jnp.float32),
                 var=jnp.ones((cout,), jnp.float32))
        return p

    def sa(in_channel, mlp_list):
        branches = []
        for mlp in mlp_list:
            last, layers = in_channel + 3, []
            for out in mlp:
                layers.append(conv_bn(last, out))
                last = out
            branches.append(layers)
        return branches

    def fp(in_channel, mlp):
        last, layers = in_channel, []
        for out in mlp:
            layers.append(conv_bn(last, out))
            last = out
        return layers

    s = 4
    params = {
        "sa1": sa(6, [[32 * s, 32 * s], [32 * s, 32 * s]]),
        "sa2": sa(64 * s, [[64 * s, 128 * s], [64 * s, 128 * s]]),
        "sa3": sa(256 * s, [[196 * s, 256 * s], [196 * s, 256 * s]]),
        "fp3": fp((512 + 256) * s, [256 * s, 256 * s]),
        "fp2": fp((256 + 64) * s, [128 * s, 128 * s]),
        "fp1": fp(128 * s + 6, [64 * s, 32 * s]),
        "offset1": conv_bn(32 * s, 16),
        "offset2": conv(16, 3, zero_weight=True),   # nn.init.zeros_(weight)
        "dist1": conv_bn(32 * s, 16),
        "dist2": conv(16, 1, zero_weight=True),     # nn.init.zeros_(weight)
        "cls1": conv_bn(32 * s, 17),
        "cls2": conv(17, 17),
    }
    return params


# ----------------------------------------------------------------------------
# Forward pass (equivalent to get_model.forward, inference mode)
# ----------------------------------------------------------------------------
def forward(params, xyz):
    # xyz: [B, 6, N] channel-first (PyTorch NCW)
    B, _, N = xyz.shape
    l0_xyz_cf = xyz[:, :3, :]
    l0_points = jnp.transpose(xyz, (0, 2, 1))        # [B, N, 6] channel-last, f32
    l0_xyz = l0_points[:, :, :3]

    l1_xyz, l1_points = set_abstraction_msg(l0_xyz, l0_points, 1024,
                                            [0.025, 0.05], [32, 64], params["sa1"])
    l2_xyz, l2_points = set_abstraction_msg(l1_xyz, l1_points, 512,
                                            [0.05, 0.1], [32, 64], params["sa2"])
    l3_xyz, l3_points = set_abstraction_msg(l2_xyz, l2_points, 256,
                                            [0.1, 0.2], [32, 64], params["sa3"])

    l2_points = feature_propagation(l2_xyz, l3_xyz, l2_points, l3_points, params["fp3"])
    l1_points = feature_propagation(l1_xyz, l2_xyz, l1_points, l2_points, params["fp2"])
    l0_feat = feature_propagation(l0_xyz, l1_xyz, l0_points, l1_points, params["fp1"])

    feat = l0_feat.reshape(B * N, l0_feat.shape[-1])              # [B*N, 128]

    # Head stage-1: offset1 | dist1 | cls1 share the same input -> one fused kernel.
    w_o, s_o = _fold_bn(params["offset1"])
    w_d, s_d = _fold_bn(params["dist1"])
    w_c, s_c = _fold_bn(params["cls1"])
    w_cat = jnp.concatenate([w_o, w_d, w_c], axis=1)              # [128, 49]
    s_cat = jnp.concatenate([s_o, s_d, s_c], axis=0)
    h = conv1x1_affine(feat, w_cat, s_cat, relu=True, out_dtype=jnp.float32)
    h_off, h_dist, h_cls = h[:, :16], h[:, 16:32], h[:, 32:49]

    # Tiny stage-2 heads (Cout <= 17, Cin <= 17): plain XLA matmuls — MXU padding
    # waste and kernel-launch overhead would exceed the compute.
    offset = h_off @ params["offset2"]["w"] + params["offset2"]["b"]
    dist = h_dist @ params["dist2"]["w"] + params["dist2"]["b"]
    cls = h_cls @ params["cls2"]["w"] + params["cls2"]["b"]

    cf = lambda a: jnp.transpose(a.astype(jnp.float32), (0, 2, 1))  # [B,N,C] -> [B,C,N]
    return [
        cf(l0_feat),                      # l0_points   [B, 128, N]
        cf(l3_points),                    # l3_points   [B, 2048, 256]
        l0_xyz_cf,                        # l0_xyz      [B, 3, N]
        cf(l3_xyz),                       # l3_xyz      [B, 3, 256]
        cf(offset.reshape(B, N, 3)),      # offset      [B, 3, N]
        cf(dist.reshape(B, N, 1)),        # dist        [B, 1, N]
        cf(cls.reshape(B, N, 17)),        # cls_pred    [B, 17, N]
    ]


if __name__ == "__main__":
    key = jax.random.PRNGKey(0)
    kp, kx, kt = jax.random.split(key, 3)

    # --- tiny self-check: fused conv+BN+ReLU+group-max kernel vs plain JAX ---
    k1, k2, k3 = jax.random.split(kt, 3)
    xs = jax.random.normal(k1, (512, 128), jnp.float32)
    ws = jax.random.normal(k2, (128, 128), jnp.float32) * 0.05
    sh = jax.random.normal(k3, (128,), jnp.float32) * 0.1
    ref = jnp.max(jnp.maximum(xs @ ws + sh, 0.0).reshape(16, 32, 128), axis=1)
    got = conv1x1_affine(xs, ws, sh, relu=True, group=32, out_dtype=jnp.float32)
    got, ref = jax.block_until_ready((got, ref))
    assert got.shape == ref.shape
    assert float(jnp.max(jnp.abs(got - ref))) < 5e-2, "fused kernel mismatch vs reference"

    params = build_params(kp)
    B, N = 1, 1024
    x = jax.random.normal(kx, (B, 6, N), jnp.float32)

    outs = jax.jit(forward)(params, x)
    outs = jax.block_until_ready(outs)

    expected_shapes = [(B, 128, N), (B, 2048, 256), (B, 3, N), (B, 3, 256),
                       (B, 3, N), (B, 1, N), (B, 17, N)]
    assert [tuple(o.shape) for o in outs] == expected_shapes
    assert all(bool(jnp.all(jnp.isfinite(o))) for o in outs)
    print("KERNEL_OK")
</pallas_src>

<mosaic_0001>
module attributes {stable_mosaic.version = 11 : i64} {
  func.func @_conv_affine_kernel(%arg0: i32, %arg1: i32, %arg2: memref<512x128xbf16, #tpu.memory_space<vmem>>, %arg3: memref<128x128xbf16, #tpu.memory_space<vmem>>, %arg4: memref<1x128xf32, #tpu.memory_space<vmem>>, %arg5: memref<16x128xf32, #tpu.memory_space<vmem>>) attributes {dimension_semantics = [#tpu.dimension_semantics<parallel>, #tpu.dimension_semantics<parallel>], iteration_bounds = array<i64: 1, 1>, scalar_prefetch = 0 : i64, scratch_operands = 0 : i64, tpu.core_type = #tpu.core_type<tc>, window_params = [{transform_indices = @transform_0, window_bounds = array<i64: 512, 128>}, {transform_indices = @transform_1, window_bounds = array<i64: 128, 128>}, {transform_indices = @transform_2, window_bounds = array<i64: 1, 128>}, {transform_indices = @transform_3, window_bounds = array<i64: 16, 128>}]} {
    %c0 = arith.constant 0 : index
    %c0_0 = arith.constant 0 : index
    %0 = vector.load %arg2[%c0, %c0_0] : memref<512x128xbf16, #tpu.memory_space<vmem>>, vector<512x128xbf16>
    %c0_1 = arith.constant 0 : index
    %c0_2 = arith.constant 0 : index
    %1 = vector.load %arg3[%c0_1, %c0_2] : memref<128x128xbf16, #tpu.memory_space<vmem>>, vector<128x128xbf16>
    %cst = arith.constant dense<0.000000e+00> : vector<512x128xf32>
    %2 = tpu.matmul %0, %1, %cst {dimension_numbers = #tpu.dot_dimension_numbers<[1], [0], [0], [1], [0, 0, 1, 1], [], []>} : vector<512x128xbf16>, vector<128x128xbf16>, vector<512x128xf32> -> vector<512x128xf32>
    %c0_3 = arith.constant 0 : index
    %c0_4 = arith.constant 0 : index
    %3 = vector.load %arg4[%c0_3, %c0_4] : memref<1x128xf32, #tpu.memory_space<vmem>>, vector<1x128xf32>
    %4 = vector.broadcast %3 : vector<1x128xf32> to vector<512x128xf32>
    %5 = arith.addf %2, %4 : vector<512x128xf32>
    %cst_5 = arith.constant 0.000000e+00 : f32
    %6 = vector.broadcast %cst_5 : f32 to vector<512x128xf32>
    %7 = arith.maximumf %5, %6 : vector<512x128xf32>
    %8 = vector.shape_cast %7 : vector<512x128xf32> to vector<16x32x128xf32>
    %cst_6 = arith.constant dense<0xFF800000> : vector<16x128xf32>
    %9 = vector.multi_reduction <maximumf>, %8, %cst_6 [1] : vector<16x32x128xf32> to vector<16x128xf32>
    %c0_7 = arith.constant 0 : index
    %c0_8 = arith.constant 0 : index
    %10 = vector.load %arg5[%c0_7, %c0_8] : memref<16x128xf32, #tpu.memory_space<vmem>>, vector<16x128xf32>
    tpu.vector_store %arg5[%c0_7, %c0_8], %9 {strides = array<i32>} : memref<16x128xf32, #tpu.memory_space<vmem>>, vector<16x128xf32>,
    return
  }
  func.func @transform_0(%arg0: i32, %arg1: i32) -> (i32, i32) {
    %c0_i32 = arith.constant 0 : i32
    %c0_i32_0 = arith.constant 0 : i32
    return %arg0, %c0_i32 : i32, i32
  }
  func.func @transform_1(%arg0: i32, %arg1: i32) -> (i32, i32) {
    %c0_i32 = arith.constant 0 : i32
    %c0_i32_0 = arith.constant 0 : i32
    return %c0_i32, %arg1 : i32, i32
  }
  func.func @transform_2(%arg0: i32, %arg1: i32) -> (i32, i32) {
    %c0_i32 = arith.constant 0 : i32
    %c0_i32_0 = arith.constant 0 : i32
    return %c0_i32, %arg1 : i32, i32
  }
  func.func @transform_3(%arg0: i32, %arg1: i32) -> (i32, i32) {
    %c0_i32 = arith.constant 0 : i32
    return %arg0, %arg1 : i32, i32
  }
}

</mosaic_0001>

<bundles_post_ra>
// kernel: tpu_custom_call.1
= control target key start
LH: loop header
LB: loop body
LE: loop exit
PB: predicated region body
PF: predicated region fallthrough
CT: control target
= control target key end

     0   :  { %8 = vsyncpa [#allocation3], 0  ;;  %s1371_s0 = inlined_call_operand.hbm [shape: bf16[512,128], index: 0, kind: input, shape index: {}]   ;;  %s1372_s1 = inlined_call_operand.hbm [shape: bf16[128,128], index: 1, kind: input, shape index: {}]   ;;  %s1373_s2 = inlined_call_operand.vmem [shape: f32[1,128], index: 2, kind: input, shape index: {}]   ;;  %s1374_s3 = inlined_call_operand.hbm [shape: f32[16,128], index: 3, kind: output, shape index: {}]  }
   0x1   :  { %9 = vsyncpa [#allocation6], 0 }
   0x2   :  { %10 = vsyncpa [#allocation4], 0  ;;  %s1223_s12 = smov [#allocation2]   ;;  %s1151_s16 = scalar_lea.hbm %s1371_s0, 4096 }
   0x3   :  { %s16_s13 = sshll.u32 %s1223_s12, 4  ;;  %p1152_p0 = scmp.ne.s32.totalorder %s1371_s0, %s1151_s16  ;;  %s17_s13 = int_to_ptr.vmem [resolvable:$true] %s16_s13 }
   0x4   :  { %p1155_p1 = scmp.lt.u32.totalorder %s1151_s16, %s1371_s0 }
   0x6   :  { %p1157_p2 = pnand %p1155_p1, %p1152_p0 }
   0x8   :  { %1160 = shalt.err (!%p1157_p2)
}
   0x9   :  { %s1161_s21 = scalar_lea.vmem %s17_s13, 4096  ;;  %p1166_p4 = scmp.lt.s32.totalorder %s17_s13, %s17_s13 }
   0xa   :  { %p1162_p3 = scmp.ne.s32.totalorder %s17_s13, %s1161_s21  ;;  %p1167_p5 = scmp.lt.s32.totalorder %s1161_s21, %s1161_s21 }
   0xc   :  { %p1168_p6 = por %p1167_p5, %p1166_p4 }
   0xe   :  { %p1169_p7 = pnand %p1168_p6, %p1162_p3 }
  0x10   :  { %1172 = shalt.err (!%p1169_p7)
}
  0x11   :  { %s1224_s22 = smov 64   ;;  %s1225_s23 = smov 4  }
  0x12   :  { %22 = dma.hbm_to_vmem [thread:$0]  %s1371_s0, 4096, %s17_s13, [#allocation3], %s1224_s22, %s1224_s22, %s1225_s23  }
  0x13   :  { %s1226_s26 = smov [#allocation5]   ;;  %s1173_s30 = scalar_lea.hbm %s1372_s1, 1024 }
  0x14   :  { %s28_s27 = sshll.u32 %s1226_s26, 4  ;;  %p1174_p8 = scmp.ne.s32.totalorder %s1372_s1, %s1173_s30  ;;  %s29_s27 = int_to_ptr.vmem [resolvable:$true] %s28_s27 }
  0x15   :  { %p1177_p9 = scmp.lt.u32.totalorder %s1173_s30, %s1372_s1 }
  0x17   :  { %p1179_p10 = pnand %p1177_p9, %p1174_p8 }
  0x19   :  { %1182 = shalt.err (!%p1179_p10)
}
  0x1a   :  { %s1183_s8 = scalar_lea.vmem %s29_s27, 1024  ;;  %p1188_p12 = scmp.lt.s32.totalorder %s29_s27, %s29_s27 }
  0x1b   :  { %p1184_p11 = scmp.ne.s32.totalorder %s29_s27, %s1183_s8  ;;  %p1189_p13 = scmp.lt.s32.totalorder %s1183_s8, %s1183_s8 }
  0x1d   :  { %p1190_p0 = por %p1189_p13, %p1188_p12 }
  0x1f   :  { %p1191_p1 = pnand %p1190_p0, %p1184_p11 }
  0x21   :  { %1194 = shalt.err (!%p1191_p1)
}
  0x22   :  { %34 = dma.hbm_to_vmem [thread:$0]  %s1372_s1, 1024, %s29_s27, [#allocation6], %s1224_s22, %s1224_s22, %s1225_s23  }
  0x23   :  { %1217 = dma.done.wait [#allocation3], 4096  }
  0x24   :  { %1218 = vsyncadd [#allocation3], 4294963200 }
  0x25   :  { %1219 = dma.done.wait [#allocation6], 1024  }
  0x26   :  { %1220 = vsyncadd [#allocation6], 4294966272  ;;  %v1111_v0 = vld [vmem:[#allocation5] sm:$0xff]   ;;  %v1112_v1 = vld [vmem:[#allocation5 + $0x8] sm:$0xff]   ;;  %vm884_vm0 = vcmask 1041409   ;;  %vm886_vm1 = vcmask 1042434  }
  0x27   :  { %1008 = vmatprep.subr.bf16.mxu0 %v1111_v0  ;;  %1088 = vmatprep.subr.bf16.mxu1 %v1111_v0  ;;  %v1113_v2 = vld [vmem:[#allocation5 + $0x10] sm:$0xff]   ;;  %v1114_v3 = vld [vmem:[#allocation5 + $0x18] sm:$0xff]   ;;  %v1119_v4 = vld [vmem:[#allocation2] sm:$0xff]   ;;  %vm888_vm2 = vcmask 1043459   ;;  %vm890_vm3 = vcmask 1044484   ;;  %vm892_vm4 = vcmask 1045509  }
  0x28   :  { %1009 = vmatpush3.bf16.msra.mxu0 %v1111_v0  ;;  %1096 = vmatpush3.bf16.msra.mxu1 %v1111_v0  ;;  %v1120_v5 = vld [vmem:[#allocation2 + $0x80] sm:$0xff]   ;;  %v1116_v7 = vld [vmem:[#allocation5 + $0x28] sm:$0xff]   ;;  %v1117_v8 = vld [vmem:[#allocation5 + $0x30] sm:$0xff]   ;;  %vm894_vm5 = vcmask 1046534   ;;  %vm896_vm6 = vcmask 1047559  }
  0x29   :  { %1010 = vmatprep.subr.bf16.mxu0 %v1112_v1  ;;  %1089 = vmatprep.subr.bf16.mxu1 %v1112_v1  ;;  %v1115_v6 = vld [vmem:[#allocation5 + $0x20] sm:$0xff]   ;;  %v1118_v9 = vld [vmem:[#allocation5 + $0x38] sm:$0xff]   ;;  %v1121_v10 = vld [vmem:[#allocation2 + $0x8] sm:$0xff]  }
  0x2a   :  { %1024 = vmatprep.mubr.bf16.mxu0 %v1119_v4  ;;  %1056 = vmatprep.mubr.bf16.mxu1 %v1120_v5  ;;  %v1122_v11 = vld [vmem:[#allocation2 + $0x88] sm:$0xff]   ;;  %v1123_v12 = vld [vmem:[#allocation2 + $0x10] sm:$0xff]   ;;  %v1125_v14 = vld [vmem:[#allocation2 + $0x18] sm:$0xff]  }
  0x2b   :  { %v1124_v13 = vld [vmem:[#allocation2 + $0x90] sm:$0xff]   ;;  %v1126_v15 = vld [vmem:[#allocation2 + $0x98] sm:$0xff]   ;;  %v1127_v16 = vld [vmem:[#allocation2 + $0x20] sm:$0xff]  }
  0x2c   :  { %1011 = vmatpush3.bf16.msra.mxu0 %v1112_v1  ;;  %1097 = vmatpush3.bf16.msra.mxu1 %v1112_v1  ;;  %v1128_v17 = vld [vmem:[#allocation2 + $0xa0] sm:$0xff]   ;;  %v1129_v18 = vld [vmem:[#allocation2 + $0x28] sm:$0xff]   ;;  %v1131_v20 = vld [vmem:[#allocation2 + $0x30] sm:$0xff]  }
  0x2d   :  { %1012 = vmatprep.subr.bf16.mxu0 %v1113_v2  ;;  %1090 = vmatprep.subr.bf16.mxu1 %v1113_v2  ;;  %v1130_v19 = vld [vmem:[#allocation2 + $0xa8] sm:$0xff]   ;;  %v1132_v21 = vld [vmem:[#allocation2 + $0xb0] sm:$0xff]   ;;  %v1133_v22 = vld [vmem:[#allocation2 + $0x38] sm:$0xff]  }
  0x2e   :  { %v1134_v23 = vld [vmem:[#allocation2 + $0xb8] sm:$0xff]   ;;  %v1135_v24 = vld [vmem:[#allocation2 + $0x40] sm:$0xff]   ;;  %v1137_v26 = vld [vmem:[#allocation2 + $0x48] sm:$0xff]  }
  0x2f   :  { %v1136_v25 = vld [vmem:[#allocation2 + $0xc0] sm:$0xff]   ;;  %v1138_v27 = vld [vmem:[#allocation2 + $0xc8] sm:$0xff]   ;;  %v1139_v28 = vld [vmem:[#allocation2 + $0x50] sm:$0xff]  }
  0x30   :  { %1013 = vmatpush3.bf16.msra.mxu0 %v1113_v2  ;;  %1098 = vmatpush3.bf16.msra.mxu1 %v1113_v2  ;;  %v1140_v29 = vld [vmem:[#allocation2 + $0xd0] sm:$0xff]   ;;  %v1141_v30 = vld [vmem:[#allocation2 + $0x58] sm:$0xff]   ;;  %v1143_v32 = vld [vmem:[#allocation2 + $0x60] sm:$0xff]  }
  0x31   :  { %1014 = vmatprep.subr.bf16.mxu0 %v1114_v3  ;;  %1091 = vmatprep.subr.bf16.mxu1 %v1114_v3  ;;  %v1142_v31 = vld [vmem:[#allocation2 + $0xd8] sm:$0xff]   ;;  %v1144_v33 = vld [vmem:[#allocation2 + $0xe0] sm:$0xff]   ;;  %v1145_v34 = vld [vmem:[#allocation2 + $0x68] sm:$0xff]  }
  0x32   :  { %v1146_v35 = vld [vmem:[#allocation2 + $0xe8] sm:$0xff]   ;;  %v1147_v36 = vld [vmem:[#allocation2 + $0x70] sm:$0xff]   ;;  %v1149_v38 = vld [vmem:[#allocation2 + $0x78] sm:$0xff]  }
  0x33   :  { %v1148_v37 = vld [vmem:[#allocation2 + $0xf0] sm:$0xff]   ;;  %v1150_v39 = vld [vmem:[#allocation2 + $0xf8] sm:$0xff]   ;;  %v1277_v40 = vld [vmem:[%s1373_s2] ss:$0 sm:$0xff]  ;;  %s1227_s2 = smov [#allocation7]  }
  0x34   :  { %1015 = vmatpush3.bf16.msra.mxu0 %v1114_v3  ;;  %1099 = vmatpush3.bf16.msra.mxu1 %v1114_v3  ;;  %s914_s11 = sshll.u32 %s1227_s2, 4  ;;  %s915_s11 = int_to_ptr.vmem [resolvable:$true] %s914_s11 }
  0x35   :  { %1016 = vmatprep.subr.bf16.mxu0 %v1115_v6  ;;  %1092 = vmatprep.subr.bf16.mxu1 %v1115_v6  ;;  %s1195_s12 = scalar_lea.vmem %s915_s11, 256  ;;  %p1200_p3 = scmp.lt.s32.totalorder %s915_s11, %s915_s11 }
  0x36   :  { %p1196_p2 = scmp.ne.s32.totalorder %s915_s11, %s1195_s12  ;;  %p1201_p4 = scmp.lt.s32.totalorder %s1195_s12, %s1195_s12 }
  0x38   :  { %1017 = vmatpush3.bf16.msra.mxu0 %v1115_v6  ;;  %1100 = vmatpush3.bf16.msra.mxu1 %v1115_v6  ;;  %p1202_p5 = por %p1201_p4, %p1200_p3 }
  0x39   :  { %1018 = vmatprep.subr.bf16.mxu0 %v1116_v7  ;;  %1093 = vmatprep.subr.bf16.mxu1 %v1116_v7 }
  0x3a   :  { %p1203_p6 = pnand %p1202_p5, %p1196_p2 }
  0x3c   :  { %1019 = vmatpush3.bf16.msra.mxu0 %v1116_v7  ;;  %1101 = vmatpush3.bf16.msra.mxu1 %v1116_v7 }
  0x3d   :  { %1020 = vmatprep.subr.bf16.mxu0 %v1117_v8  ;;  %1094 = vmatprep.subr.bf16.mxu1 %v1117_v8 }
  0x40   :  { %1021 = vmatpush3.bf16.msra.mxu0 %v1117_v8  ;;  %1102 = vmatpush3.bf16.msra.mxu1 %v1117_v8 }
  0x41   :  { %1022 = vmatprep.subr.bf16.mxu0 %v1118_v9  ;;  %1095 = vmatprep.subr.bf16.mxu1 %v1118_v9 }
  0x44   :  { %1023 = vmatpush3.bf16.msra.mxu0 %v1118_v9  ;;  %1103 = vmatpush3.bf16.msra.mxu1 %v1118_v9 }
  0x47   :  { %1025 = vmatmul.mubr.bf16.vlgmr.msra.gmra.mrb[0].mxu0 %v1121_v10  ;;  %1057 = vmatmul.mubr.bf16.vlgmr.msra.gmra.mrb[0].mxu1 %v1122_v11 }
  0x48   :  { %1028 = vmatprep.mubr.bf16.mxu0 %v1123_v12  ;;  %1060 = vmatprep.mubr.bf16.mxu1 %v1124_v13 }
  0x4f   :  { %1029 = vmatmul.mubr.bf16.gmra.mrb[4].mxu0 %v1125_v14  ;;  %1061 = vmatmul.mubr.bf16.gmra.mrb[4].mxu1 %v1126_v15 }
  0x50   :  { %1032 = vmatprep.mubr.bf16.mxu0 %v1127_v16  ;;  %1064 = vmatprep.mubr.bf16.mxu1 %v1128_v17 }
  0x57   :  { %1033 = vmatmul.mubr.bf16.gmra.mrb[8].mxu0 %v1129_v18  ;;  %1065 = vmatmul.mubr.bf16.gmra.mrb[8].mxu1 %v1130_v19 }
  0x58   :  { %1036 = vmatprep.mubr.bf16.mxu0 %v1131_v20  ;;  %1068 = vmatprep.mubr.bf16.mxu1 %v1132_v21 }
  0x5f   :  { %1037 = vmatmul.mubr.bf16.gmra.mrb[12].mxu0 %v1133_v22  ;;  %1069 = vmatmul.mubr.bf16.gmra.mrb[12].mxu1 %v1134_v23 }
  0x60   :  { %1040 = vmatprep.mubr.bf16.mxu0 %v1135_v24  ;;  %1072 = vmatprep.mubr.bf16.mxu1 %v1136_v25 }
  0x67   :  { %1041 = vmatmul.mubr.bf16.gmra.mrb[16].mxu0 %v1137_v26  ;;  %1073 = vmatmul.mubr.bf16.gmra.mrb[16].mxu1 %v1138_v27 }
  0x68   :  { %1044 = vmatprep.mubr.bf16.mxu0 %v1139_v28  ;;  %1076 = vmatprep.mubr.bf16.mxu1 %v1140_v29 }
  0x6f   :  { %1045 = vmatmul.mubr.bf16.gmra.mrb[20].mxu0 %v1141_v30  ;;  %1077 = vmatmul.mubr.bf16.gmra.mrb[20].mxu1 %v1142_v31 }
  0x70   :  { %1048 = vmatprep.mubr.bf16.mxu0 %v1143_v32  ;;  %1080 = vmatprep.mubr.bf16.mxu1 %v1144_v33 }
  0x77   :  { %1049 = vmatmul.mubr.bf16.gmra.mrb[24].mxu0 %v1145_v34  ;;  %1081 = vmatmul.mubr.bf16.gmra.mrb[24].mxu1 %v1146_v35 }
  0x78   :  { %1052 = vmatprep.mubr.bf16.mxu0 %v1147_v36  ;;  %1084 = vmatprep.mubr.bf16.mxu1 %v1148_v37 }
  0x7f   :  { %1053 = vmatmul.mubr.bf16.gmra.mrb[28].mxu0 %v1149_v38  ;;  %1085 = vmatmul.mubr.bf16.gmra.mrb[28].mxu1 %v1150_v39 }
 0x11a   :  { %v1026_v41 = vpop.f32.mrb[0].mxu0  ;;  %v1058_v42 = vpop.f32.mrb[0].mxu1 }
 0x11b   :  { %v405_v43 = vpop.f32.mrb[1].mxu0  ;;  %v533_v44 = vpop.f32.mrb[1].mxu1  ;;  %v414_v51 = vadd.f32 %v1026_v41, %v1277_v40  ;;  %v542_v52 = vadd.f32 %v1058_v42, %v1277_v40 }
 0x11c   :  { %v406_v45 = vadd.f32 %v1277_v40, %v405_v43  ;;  %v534_v46 = vadd.f32 %v1277_v40, %v533_v44  ;;  %v1027_v47 = vpop.f32.mrb[2].mxu0  ;;  %v1059_v48 = vpop.f32.mrb[2].mxu1 }
 0x11d   :  { %v408_v49 = vpop.f32.mrb[3].mxu0  ;;  %v536_v50 = vpop.f32.mrb[3].mxu1  ;;  %v417_v55 = vadd.f32 %v1027_v47, %v1277_v40  ;;  %v545_v56 = vadd.f32 %v1059_v48, %v1277_v40  ;;  %v662_v61 = vmax.f32 %v414_v51, 0.0  ;;  %v694_v62 = vmax.f32 %v542_v52, 0.0 }
 0x11e   :  { %v409_v53 = vadd.f32 %v1277_v40, %v408_v49  ;;  %v537_v54 = vadd.f32 %v1277_v40, %v536_v50  ;;  %v660_v57 = vmax.f32 %v406_v45, 0.0  ;;  %v692_v58 = vmax.f32 %v534_v46, 0.0 }
 0x11f   :  { %v663_v5 = vmax.f32 %v417_v55, 0.0  ;;  %v695_v6 = vmax.f32 %v545_v56, 0.0 }
 0x120   :  { %v661_v59 = vmax.f32 %v409_v53, 0.0  ;;  %v693_v60 = vmax.f32 %v537_v54, 0.0 }
 0x122   :  { %v724_v63 = vmax.f32 %v660_v57, %v661_v59  ;;  %v796_v0 = vmax.f32 %v692_v58, %v693_v60  ;;  %v1030_v1 = vpop.f32.mrb[4].mxu0  ;;  %v1062_v2 = vpop.f32.mrb[4].mxu1 }
 0x123   :  { %v421_v3 = vpop.f32.mrb[5].mxu0  ;;  %v549_v4 = vpop.f32.mrb[5].mxu1  ;;  %v430_v17 = vadd.f32 %v1030_v1, %v1277_v40  ;;  %v558_v18 = vadd.f32 %v1062_v2, %v1277_v40 }
 0x124   :  { %v725_v7 = vmax.f32 %v724_v63, %v662_v61  ;;  %v797_v8 = vmax.f32 %v796_v0, %v694_v62  ;;  %v1031_v9 = vpop.f32.mrb[6].mxu0  ;;  %v1063_v10 = vpop.f32.mrb[6].mxu1  ;;  %v422_v11 = vadd.f32 %v1277_v40, %v421_v3  ;;  %v550_v12 = vadd.f32 %v1277_v40, %v549_v4 }
 0x125   :  { %v424_v13 = vpop.f32.mrb[7].mxu0  ;;  %v552_v14 = vpop.f32.mrb[7].mxu1  ;;  %v433_v23 = vadd.f32 %v1031_v9, %v1277_v40  ;;  %v561_v24 = vadd.f32 %v1063_v10, %v1277_v40  ;;  %v666_v31 = vmax.f32 %v430_v17, 0.0  ;;  %v698_v32 = vmax.f32 %v558_v18, 0.0 }
 0x126   :  { %v726_v15 = vmax.f32 %v725_v7, %v663_v5  ;;  %v798_v16 = vmax.f32 %v797_v8, %v695_v6  ;;  %v425_v19 = vadd.f32 %v1277_v40, %v424_v13  ;;  %v553_v20 = vadd.f32 %v1277_v40, %v552_v14 }
 0x127   :  { %v664_v25 = vmax.f32 %v422_v11, 0.0  ;;  %v696_v26 = vmax.f32 %v550_v12, 0.0  ;;  %v667_v44 = vmax.f32 %v433_v23, 0.0  ;;  %v699_v45 = vmax.f32 %v561_v24, 0.0 }
 0x128   :  { %v727_v21 = vrot.slane %v726_v15, 4  ;;  %v799_v22 = vrot.slane %v798_v16, 4  ;;  %v665_v27 = vmax.f32 %v425_v19, 0.0  ;;  %v697_v28 = vmax.f32 %v553_v20, 0.0 }
 0x12a   :  { %v728_v29 = vmax.f32 %v726_v15, %v727_v21  ;;  %v800_v30 = vmax.f32 %v798_v16, %v799_v22  ;;  %v1034_v33 = vpop.f32.mrb[8].mxu0  ;;  %v1066_v34 = vpop.f32.mrb[8].mxu1  ;;  %v733_v35 = vmax.f32 %v664_v25, %v665_v27  ;;  %v805_v36 = vmax.f32 %v696_v26, %v697_v28 }
 0x12b   :  { %v446_v37 = vadd.f32 %v1034_v33, %v1277_v40  ;;  %v574_v38 = vadd.f32 %v1066_v34, %v1277_v40  ;;  %v437_v39 = vpop.f32.mrb[9].mxu0  ;;  %v565_v41 = vpop.f32.mrb[9].mxu1 }
 0x12c   :  { %v729_v42 = vrot.slane %v728_v29, 2  ;;  %v801_v43 = vrot.slane %v800_v30, 2  ;;  %v1035_v46 = vpop.f32.mrb[10].mxu0  ;;  %v1067_v47 = vpop.f32.mrb[10].mxu1  ;;  %v734_v48 = vmax.f32 %v733_v35, %v666_v31  ;;  %v806_v49 = vmax.f32 %v805_v36, %v698_v32 }
 0x12d   :  { %v438_v50 = vadd.f32 %v1277_v40, %v437_v39  ;;  %v566_v51 = vadd.f32 %v1277_v40, %v565_v41  ;;  %v440_v52 = vpop.f32.mrb[11].mxu0  ;;  %v568_v53 = vpop.f32.mrb[11].mxu1  ;;  %v670_v56 = vmax.f32 %v446_v37, 0.0  ;;  %v702_v57 = vmax.f32 %v574_v38, 0.0 }
 0x12e   :  { %v730_v54 = vmax.f32 %v728_v29, %v729_v42  ;;  %v802_v55 = vmax.f32 %v800_v30, %v801_v43  ;;  %v735_v58 = vmax.f32 %v734_v48, %v667_v44  ;;  %v807_v59 = vmax.f32 %v806_v49, %v699_v45 }
 0x12f   :  { %v449_v60 = vadd.f32 %v1035_v46, %v1277_v40  ;;  %v577_v61 = vadd.f32 %v1067_v47, %v1277_v40  ;;  %v441_v0 = vadd.f32 %v1277_v40, %v440_v52  ;;  %v569_v1 = vadd.f32 %v1277_v40, %v568_v53 }
 0x130   :  { %v731_v62 = vrot.slane %v730_v54, 1  ;;  %v803_v63 = vrot.slane %v802_v55, 1  ;;  %v736_v2 = vrot.slane %v735_v58, 4  ;;  %v808_v3 = vrot.slane %v807_v59, 4 }
 0x131   :  { %v668_v4 = vmax.f32 %v438_v50, 0.0  ;;  %v700_v5 = vmax.f32 %v566_v51, 0.0  ;;  %v671_v6 = vmax.f32 %v449_v60, 0.0  ;;  %v703_v7 = vmax.f32 %v577_v61, 0.0 }
 0x132   :  { %v669_v8 = vmax.f32 %v441_v0, 0.0  ;;  %v701_v9 = vmax.f32 %v569_v1, 0.0  ;;  %v1038_v10 = vpop.f32.mrb[12].mxu0  ;;  %v1070_v11 = vpop.f32.mrb[12].mxu1  ;;  %v737_v12 = vmax.f32 %v735_v58, %v736_v2  ;;  %v809_v13 = vmax.f32 %v807_v59, %v808_v3 }
 0x133   :  { %v462_v14 = vadd.f32 %v1038_v10, %v1277_v40  ;;  %v590_v15 = vadd.f32 %v1070_v11, %v1277_v40  ;;  %v453_v16 = vpop.f32.mrb[13].mxu0  ;;  %v581_v17 = vpop.f32.mrb[13].mxu1  ;;  %v732_v18 = vmax.f32 %v730_v54, %v731_v62  ;;  %v804_v19 = vmax.f32 %v802_v55, %v803_v63 }
 0x134   :  { %v742_v20 = vmax.f32 %v668_v4, %v669_v8  ;;  %v814_v21 = vmax.f32 %v700_v5, %v701_v9  ;;  %v1039_v22 = vpop.f32.mrb[14].mxu0  ;;  %v1071_v23 = vpop.f32.mrb[14].mxu1  ;;  %v738_v24 = vrot.slane %v737_v12, 2  ;;  %v810_v25 = vrot.slane %v809_v13, 2 }
 0x135   :  { %v454_v26 = vadd.f32 %v1277_v40, %v453_v16  ;;  %v582_v27 = vadd.f32 %v1277_v40, %v581_v17  ;;  %v456_v28 = vpop.f32.mrb[15].mxu0  ;;  %v584_v29 = vpop.f32.mrb[15].mxu1  ;;  %v674_v32 = vmax.f32 %v462_v14, 0.0  ;;  %v706_v33 = vmax.f32 %v590_v15, 0.0 }
 0x136   :  { %v743_v30 = vmax.f32 %v742_v20, %v670_v56  ;;  %v815_v31 = vmax.f32 %v814_v21, %v702_v57  ;;  %v739_v34 = vmax.f32 %v737_v12, %v738_v24  ;;  %v811_v35 = vmax.f32 %v809_v13, %v810_v25 }
 0x137   :  { %v465_v36 = vadd.f32 %v1039_v22, %v1277_v40  ;;  %v593_v37 = vadd.f32 %v1071_v23, %v1277_v40  ;;  %v457_v41 = vadd.f32 %v1277_v40, %v456_v28  ;;  %v585_v42 = vadd.f32 %v1277_v40, %v584_v29 }
 0x138   :  { %v744_v38 = vmax.f32 %v743_v30, %v671_v6  ;;  %v816_v39 = vmax.f32 %v815_v31, %v703_v7  ;;  %v740_v43 = vrot.slane %v739_v34, 1  ;;  %v812_v44 = vrot.slane %v811_v35, 1 }
 0x139   :  { %v672_v45 = vmax.f32 %v454_v26, 0.0  ;;  %v704_v46 = vmax.f32 %v582_v27, 0.0  ;;  %v673_v49 = vmax.f32 %v457_v41, 0.0  ;;  %v705_v50 = vmax.f32 %v585_v42, 0.0 }
 0x13a   :  { %v745_v47 = vrot.slane %v744_v38, 4  ;;  %v817_v48 = vrot.slane %v816_v39, 4  ;;  %v1042_v51 = vpop.f32.mrb[16].mxu0  ;;  %v1074_v52 = vpop.f32.mrb[16].mxu1  ;;  %v741_v53 = vmax.f32 %v739_v34, %v740_v43  ;;  %v813_v54 = vmax.f32 %v811_v35, %v812_v44 }
 0x13b   :  { %v675_v55 = vmax.f32 %v465_v36, 0.0  ;;  %v707_v56 = vmax.f32 %v593_v37, 0.0  ;;  %v469_v57 = vpop.f32.mrb[17].mxu0  ;;  %v597_v58 = vpop.f32.mrb[17].mxu1  ;;  %v751_v61 = vmax.f32 %v672_v45, %v673_v49  ;;  %v823_v62 = vmax.f32 %v704_v46, %v705_v50 }
 0x13c   :  { %v746_v59 = vmax.f32 %v744_v38, %v745_v47  ;;  %v818_v60 = vmax.f32 %v816_v39, %v817_v48  ;;  %v1043_v63 = vpop.f32.mrb[18].mxu0  ;;  %v1075_v0 = vpop.f32.mrb[18].mxu1  ;;  %v885_v1 = vsel %vm884_vm0, %v741_v53, %v732_v18  ;;  %v898_v2 = vsel %vm884_vm0, %v813_v54, %v804_v19 }
 0x13d   :  { %v478_v3 = vadd.f32 %v1042_v51, %v1277_v40  ;;  %v606_v4 = vadd.f32 %v1074_v52, %v1277_v40  ;;  %v472_v5 = vpop.f32.mrb[19].mxu0  ;;  %v600_v6 = vpop.f32.mrb[19].mxu1  ;;  %v752_v9 = vmax.f32 %v751_v61, %v674_v32  ;;  %v824_v10 = vmax.f32 %v823_v62, %v706_v33 }
 0x13e   :  { %v747_v7 = vrot.slane %v746_v59, 2  ;;  %v819_v8 = vrot.slane %v818_v60, 2  ;;  %v470_v11 = vadd.f32 %v1277_v40, %v469_v57  ;;  %v598_v12 = vadd.f32 %v1277_v40, %v597_v58 }
 0x13f   :  { %v753_v15 = vmax.f32 %v752_v9, %v675_v55  ;;  %v825_v16 = vmax.f32 %v824_v10, %v707_v56  ;;  %v678_v17 = vmax.f32 %v478_v3, 0.0  ;;  %v710_v18 = vmax.f32 %v606_v4, 0.0 }
 0x140   :  { %v748_v13 = vmax.f32 %v746_v59, %v747_v7  ;;  %v820_v14 = vmax.f32 %v818_v60, %v819_v8  ;;  %v481_v19 = vadd.f32 %v1043_v63, %v1277_v40  ;;  %v609_v20 = vadd.f32 %v1075_v0, %v1277_v40 }
 0x141   :  { %v754_v23 = vrot.slane %v753_v15, 4  ;;  %v826_v24 = vrot.slane %v825_v16, 4  ;;  %v676_v27 = vmax.f32 %v470_v11, 0.0  ;;  %v708_v28 = vmax.f32 %v598_v12, 0.0 }
 0x142   :  { %v749_v21 = vrot.slane %v748_v13, 1  ;;  %v821_v22 = vrot.slane %v820_v14, 1  ;;  %v1046_v25 = vpop.f32.mrb[20].mxu0  ;;  %v1078_v26 = vpop.f32.mrb[20].mxu1  ;;  %v473_v29 = vadd.f32 %v1277_v40, %v472_v5  ;;  %v601_v30 = vadd.f32 %v1277_v40, %v600_v6 }
 0x143   :  { %v485_v31 = vpop.f32.mrb[21].mxu0  ;;  %v613_v32 = vpop.f32.mrb[21].mxu1  ;;  %v755_v35 = vmax.f32 %v753_v15, %v754_v23  ;;  %v827_v36 = vmax.f32 %v825_v16, %v826_v24  ;;  %v494_v42 = vadd.f32 %v1046_v25, %v1277_v40  ;;  %v622_v43 = vadd.f32 %v1078_v26, %v1277_v40 }
 0x144   :  { %v750_v33 = vmax.f32 %v748_v13, %v749_v21  ;;  %v822_v34 = vmax.f32 %v820_v14, %v821_v22  ;;  %v1047_v37 = vpop.f32.mrb[22].mxu0  ;;  %v1079_v38 = vpop.f32.mrb[22].mxu1  ;;  %v677_v39 = vmax.f32 %v473_v29, 0.0  ;;  %v709_v41 = vmax.f32 %v601_v30, 0.0 }
 0x145   :  { %v488_v44 = vpop.f32.mrb[23].mxu0  ;;  %v616_v45 = vpop.f32.mrb[23].mxu1  ;;  %v756_v48 = vrot.slane %v755_v35, 2  ;;  %v828_v49 = vrot.slane %v827_v36, 2  ;;  %v679_v50 = vmax.f32 %v481_v19, 0.0  ;;  %v711_v51 = vmax.f32 %v609_v20, 0.0 }
 0x146   :  { %v887_v46 = vsel %vm886_vm1, %v750_v33, %v885_v1  ;;  %v899_v47 = vsel %vm886_vm1, %v822_v34, %v898_v2  ;;  %v760_v52 = vmax.f32 %v676_v27, %v677_v39  ;;  %v832_v53 = vmax.f32 %v708_v28, %v709_v41 }
 0x147   :  { %v757_v54 = vmax.f32 %v755_v35, %v756_v48  ;;  %v829_v55 = vmax.f32 %v827_v36, %v828_v49  ;;  %v486_v56 = vadd.f32 %v1277_v40, %v485_v31  ;;  %v614_v57 = vadd.f32 %v1277_v40, %v613_v32 }
 0x148   :  { %v761_v58 = vmax.f32 %v760_v52, %v678_v17  ;;  %v833_v59 = vmax.f32 %v832_v53, %v710_v18  ;;  %v682_v60 = vmax.f32 %v494_v42, 0.0  ;;  %v714_v61 = vmax.f32 %v622_v43, 0.0 }
 0x149   :  { %v758_v62 = vrot.slane %v757_v54, 1  ;;  %v830_v63 = vrot.slane %v829_v55, 1  ;;  %v497_v0 = vadd.f32 %v1047_v37, %v1277_v40  ;;  %v625_v1 = vadd.f32 %v1079_v38, %v1277_v40 }
 0x14a   :  { %v1050_v2 = vpop.f32.mrb[24].mxu0  ;;  %v1082_v3 = vpop.f32.mrb[24].mxu1  ;;  %v762_v4 = vmax.f32 %v761_v58, %v679_v50  ;;  %v834_v5 = vmax.f32 %v833_v59, %v711_v51  ;;  %v489_v6 = vadd.f32 %v1277_v40, %v488_v44  ;;  %v617_v7 = vadd.f32 %v1277_v40, %v616_v45 }
 0x14b   :  { %v501_v8 = vpop.f32.mrb[25].mxu0  ;;  %v629_v9 = vpop.f32.mrb[25].mxu1  ;;  %v759_v10 = vmax.f32 %v757_v54, %v758_v62  ;;  %v831_v11 = vmax.f32 %v829_v55, %v830_v63  ;;  %v680_v12 = vmax.f32 %v486_v56, 0.0  ;;  %v712_v13 = vmax.f32 %v614_v57, 0.0 }
 0x14c   :  { %v1051_v14 = vpop.f32.mrb[26].mxu0  ;;  %v1083_v15 = vpop.f32.mrb[26].mxu1  ;;  %v763_v16 = vrot.slane %v762_v4, 4  ;;  %v835_v17 = vrot.slane %v834_v5, 4  ;;  %v681_v18 = vmax.f32 %v489_v6, 0.0  ;;  %v713_v19 = vmax.f32 %v617_v7, 0.0 }
 0x14d   :  { %v504_v20 = vpop.f32.mrb[27].mxu0  ;;  %v632_v21 = vpop.f32.mrb[27].mxu1  ;;  %v1332_v22 = vsel %vm888_vm2, %v759_v10, %v887_v46  ;;  %v1335_v23 = vsel %vm888_vm2, %v831_v11, %v899_v47  ;;  %v510_v24 = vadd.f32 %v1050_v2, %v1277_v40  ;;  %v638_v25 = vadd.f32 %v1082_v3, %v1277_v40 }
 0x14e   :  { %v764_v26 = vmax.f32 %v762_v4, %v763_v16  ;;  %v836_v27 = vmax.f32 %v834_v5, %v835_v17  ;;  %v769_v28 = vmax.f32 %v680_v12, %v681_v18  ;;  %v841_v29 = vmax.f32 %v712_v13, %v713_v19 }
 0x14f   :  { %v683_v30 = vmax.f32 %v497_v0, 0.0  ;;  %v715_v31 = vmax.f32 %v625_v1, 0.0  ;;  %v502_v32 = vadd.f32 %v1277_v40, %v501_v8  ;;  %v630_v33 = vadd.f32 %v1277_v40, %v629_v9 }
 0x150   :  { %v765_v34 = vrot.slane %v764_v26, 2  ;;  %v837_v35 = vrot.slane %v836_v27, 2  ;;  %v770_v36 = vmax.f32 %v769_v28, %v682_v60  ;;  %v842_v37 = vmax.f32 %v841_v29, %v714_v61 }
 0x151   :  { %v686_v38 = vmax.f32 %v510_v24, 0.0  ;;  %v718_v39 = vmax.f32 %v638_v25, 0.0  ;;  %v513_v41 = vadd.f32 %v1051_v14, %v1277_v40  ;;  %v641_v42 = vadd.f32 %v1083_v15, %v1277_v40 }
 0x152   :  { %v1054_v43 = vpop.f32.mrb[28].mxu0  ;;  %v1086_v44 = vpop.f32.mrb[28].mxu1  ;;  %v766_v45 = vmax.f32 %v764_v26, %v765_v34  ;;  %v838_v46 = vmax.f32 %v836_v27, %v837_v35  ;;  %v771_v47 = vmax.f32 %v770_v36, %v683_v30  ;;  %v843_v48 = vmax.f32 %v842_v37, %v715_v31 }
 0x153   :  { %v517_v49 = vpop.f32.mrb[29].mxu0  ;;  %v645_v50 = vpop.f32.mrb[29].mxu1  ;;  %v684_v51 = vmax.f32 %v502_v32, 0.0  ;;  %v716_v52 = vmax.f32 %v630_v33, 0.0  ;;  %v505_v53 = vadd.f32 %v1277_v40, %v504_v20  ;;  %v633_v54 = vadd.f32 %v1277_v40, %v632_v21 }
 0x154   :  { %v1055_v55 = vpop.f32.mrb[30].mxu0  ;;  %v1087_v56 = vpop.f32.mrb[30].mxu1  ;;  %v767_v57 = vrot.slane %v766_v45, 1  ;;  %v839_v58 = vrot.slane %v838_v46, 1  ;;  %v772_v59 = vrot.slane %v771_v47, 4  ;;  %v844_v60 = vrot.slane %v843_v48, 4 }
 0x155   :  { %v520_v61 = vpop.f32.mrb[31].mxu0  ;;  %v648_v62 = vpop.f32.mrb[31].mxu1  ;;  %v687_v63 = vmax.f32 %v513_v41, 0.0  ;;  %v719_v0 = vmax.f32 %v641_v42, 0.0  ;;  %v685_v1 = vmax.f32 %v505_v53, 0.0  ;;  %v717_v2 = vmax.f32 %v633_v54, 0.0 }
 0x156   :  { %v773_v3 = vmax.f32 %v771_v47, %v772_v59  ;;  %v845_v4 = vmax.f32 %v843_v48, %v844_v60  ;;  %v526_v5 = vadd.f32 %v1054_v43, %v1277_v40  ;;  %v654_v6 = vadd.f32 %v1086_v44, %v1277_v40 }
 0x157   :  { %v778_v7 = vmax.f32 %v684_v51, %v685_v1  ;;  %v850_v8 = vmax.f32 %v716_v52, %v717_v2  ;;  %v518_v9 = vadd.f32 %v1277_v40, %v517_v49  ;;  %v646_v10 = vadd.f32 %v1277_v40, %v645_v50 }
 0x158   :  { %v768_v11 = vmax.f32 %v766_v45, %v767_v57  ;;  %v840_v12 = vmax.f32 %v838_v46, %v839_v58  ;;  %v774_v13 = vrot.slane %v773_v3, 2  ;;  %v846_v14 = vrot.slane %v845_v4, 2 }
 0x159   :  { %v779_v15 = vmax.f32 %v778_v7, %v686_v38  ;;  %v851_v16 = vmax.f32 %v850_v8, %v718_v39  ;;  %v529_v17 = vadd.f32 %v1055_v55, %v1277_v40  ;;  %v657_v18 = vadd.f32 %v1087_v56, %v1277_v40 }
 0x15a   :  { %v775_v19 = vmax.f32 %v773_v3, %v774_v13  ;;  %v847_v20 = vmax.f32 %v845_v4, %v846_v14  ;;  %v688_v21 = vmax.f32 %v518_v9, 0.0  ;;  %v720_v24 = vmax.f32 %v646_v10, 0.0 }
 0x15b   :  { %v780_v25 = vmax.f32 %v779_v15, %v687_v63  ;;  %v852_v26 = vmax.f32 %v851_v16, %v719_v0  ;;  %v521_v27 = vadd.f32 %v1277_v40, %v520_v61  ;;  %v649_v28 = vadd.f32 %v1277_v40, %v648_v62 }
 0x15c   :  { %v776_v29 = vrot.slane %v775_v19, 1  ;;  %v848_v30 = vrot.slane %v847_v20, 1  ;;  %v891_v31 = vsel %vm890_vm3, %v768_v11, %v1332_v22  ;;  %v901_v32 = vsel %vm890_vm3, %v840_v12, %v1335_v23 }
 0x15d   :  { %v781_v33 = vrot.slane %v780_v25, 4  ;;  %v853_v34 = vrot.slane %v852_v26, 4  ;;  %v689_v35 = vmax.f32 %v521_v27, 0.0  ;;  %v721_v36 = vmax.f32 %v649_v28, 0.0 }
 0x15e   :  { %v777_v37 = vmax.f32 %v775_v19, %v776_v29  ;;  %v849_v38 = vmax.f32 %v847_v20, %v848_v30  ;;  %v690_v39 = vmax.f32 %v526_v5, 0.0  ;;  %v722_v41 = vmax.f32 %v654_v6, 0.0 }
 0x15f   :  { %v782_v42 = vmax.f32 %v780_v25, %v781_v33  ;;  %v854_v43 = vmax.f32 %v852_v26, %v853_v34  ;;  %v787_v44 = vmax.f32 %v688_v21, %v689_v35  ;;  %v859_v40 = vmax.f32 %v720_v24, %v721_v36 }
 0x160   :  { %v691_v45 = vmax.f32 %v529_v17, 0.0  ;;  %v723_v46 = vmax.f32 %v657_v18, 0.0  ;;  %v893_v47 = vsel %vm892_vm4, %v777_v37, %v891_v31  ;;  %v902_v22 = vsel %vm892_vm4, %v849_v38, %v901_v32 }
 0x161   :  { %v783_v48 = vrot.slane %v782_v42, 2  ;;  %v855_v23 = vrot.slane %v854_v43, 2  ;;  %v788_v49 = vmax.f32 %v787_v44, %v690_v39  ;;  %v860_v50 = vmax.f32 %v859_v40, %v722_v41 }
 0x163   :  { %v784_v51 = vmax.f32 %v782_v42, %v783_v48  ;;  %v856_v52 = vmax.f32 %v854_v43, %v855_v23  ;;  %v789_v53 = vmax.f32 %v788_v49, %v691_v45  ;;  %v861_v54 = vmax.f32 %v860_v50, %v723_v46 }
 0x165   :  { %v785_v55 = vrot.slane %v784_v51, 1  ;;  %v857_v56 = vrot.slane %v856_v52, 1  ;;  %v790_v57 = vrot.slane %v789_v53, 4  ;;  %v862_v58 = vrot.slane %v861_v54, 4 }
 0x167   :  { %v786_v59 = vmax.f32 %v784_v51, %v785_v55  ;;  %v858_v60 = vmax.f32 %v856_v52, %v857_v56  ;;  %v791_v61 = vmax.f32 %v789_v53, %v790_v57  ;;  %v863_v62 = vmax.f32 %v861_v54, %v862_v58 }
 0x169   :  { %v792_v63 = vrot.slane %v791_v61, 2  ;;  %v864_v0 = vrot.slane %v863_v62, 2  ;;  %v895_v1 = vsel %vm894_vm5, %v786_v59, %v893_v47  ;;  %v903_v2 = vsel %vm894_vm5, %v858_v60, %v902_v22 }
 0x16b   :  { %v793_v3 = vmax.f32 %v791_v61, %v792_v63  ;;  %v865_v4 = vmax.f32 %v863_v62, %v864_v0 }
 0x16d   :  { %v794_v5 = vrot.slane %v793_v3, 1  ;;  %v866_v6 = vrot.slane %v865_v4, 1 }
 0x16f   :  { %v795_v7 = vmax.f32 %v793_v3, %v794_v5  ;;  %v867_v8 = vmax.f32 %v865_v4, %v866_v6 }
 0x171   :  { %v897_v9 = vsel %vm896_vm6, %v795_v7, %v895_v1  ;;  %v904_v10 = vsel %vm896_vm6, %v867_v8, %v903_v2 }
 0x172   :  { %907 = vst [vmem:[#allocation7] sm:$0xff] %v897_v9  ;;  %908 = vst [vmem:[#allocation7 + $0x8] sm:$0xff] %v904_v10 }
 0x173   :  { %1206 = shalt.err (!%p1203_p6)
}
 0x174   :  { %s1207_s15 = scalar_lea.hbm %s1374_s3, 256 }
 0x175   :  { %p1208_p7 = scmp.ne.s32.totalorder %s1374_s3, %s1207_s15  ;;  %p1211_p8 = scmp.lt.u32.totalorder %s1207_s15, %s1374_s3 }
 0x177   :  { %p1213_p9 = pnand %p1211_p8, %p1208_p7 }
 0x179   :  { %1216 = shalt.err (!%p1213_p9)
}
 0x17a   :  { %s1228_s20 = smov 128   ;;  %s1229_s21 = smov 8  }
 0x17b   :  { %920 = dma.vmem_to_hbm [thread:$0]  %s915_s11, 256, %s1374_s3, [#allocation4], %s1228_s20, %s1228_s20, %s1229_s21  }
 0x17c   :  { %1221 = dma.done.wait [#allocation4], 256  }
 0x17d   :  { %1222 = vsyncadd [#allocation4], 4294967040 }
 0x17e   :  { %924 = vsyncpa [#allocation3], 1 }
 0x17f   :  { %925 = vsyncpa [#allocation6], 1 }
 0x180   :  { %926 = vsyncpa [#allocation4], 1 }

</bundles_post_ra>
